<compile_context>
chip_gen: v5e
topology: v5e:2x2
jax: 0.10.0
libtpu: 0.0.40
codegen_flags: <defaults>
</compile_context>

<pallas_src>
import math

import jax
import jax.numpy as jnp
from jax.experimental import pallas as pl
from jax.experimental.pallas import tpu as pltpu

N_STATES = 2
N_ACTIONS = 2
H = [10, 100, 10]

IN_PAD = 8      # input lanes: features in 0..1, constant 1.0 (bias carrier) in lane 7
HID_PAD = 128   # hidden layers padded to a full 128-lane vreg width
OUT_PAD = 8     # output lanes: Q-values in 0..1
TB_MAX = 1024   # max batch-tile rows (multiple of 8)


def _cdiv(a, b):
    return (a + b - 1) // b


def _round_up(n, m):
    return _cdiv(n, m) * m


def qnet_kernel(x_ref, w1_ref, w2_ref, w3_ref, w4_ref, out_ref):
    # Entire MLP hot path: 4 MXU matmuls + 3 ReLUs.  Biases are pre-folded into
    # the last row of each padded weight (picked up by the constant-1 lane of
    # the input, propagated through ReLU layers via W[-1,-1] = 1), so there are
    # no VPU bias adds.  Shapes: (tb,8)@(8,128) -> (tb,128)@(128,128) x2
    # -> (tb,128)@(128,8) -> (tb,8) lane-narrow output slab.
    y = jnp.maximum(jnp.dot(x_ref[...], w1_ref[...],
                            preferred_element_type=jnp.float32), 0.0)
    y = jnp.maximum(jnp.dot(y, w2_ref[...],
                            preferred_element_type=jnp.float32), 0.0)
    y = jnp.maximum(jnp.dot(y, w3_ref[...],
                            preferred_element_type=jnp.float32), 0.0)
    out_ref[...] = jnp.dot(y, w4_ref[...],
                           preferred_element_type=jnp.float32).astype(out_ref.dtype)


def fold_params(params):
    """One-time (init-time) padding + bias folding.

    Layer k weight (d_in, d_out) is placed into a zero block of shape
    (rows, cols); its bias goes in the last row (picked up by the constant-1
    lane), and W[-1, -1] = 1.0 carries the constant 1 through ReLU layers
    (omitted on the final layer).  Zero padding is inert through matmul+ReLU,
    so results match the unpadded network exactly.

      W1: (8, 128)     W2: (128, 128)     W3: (128, 128)     W4: (128, 8)
    """
    (w1, b1), (w2, b2), (w3, b3), (w4, b4) = params

    def fold(w, b, rows, cols, carry_const):
        d_in, d_out = w.shape
        wp = jnp.zeros((rows, cols), jnp.float32)
        wp = wp.at[:d_in, :d_out].set(w.astype(jnp.float32))
        wp = wp.at[rows - 1, :d_out].set(b.reshape(-1).astype(jnp.float32))
        if carry_const:
            wp = wp.at[rows - 1, cols - 1].set(1.0)
        return wp

    return (fold(w1, b1, IN_PAD, HID_PAD, True),
            fold(w2, b2, HID_PAD, HID_PAD, True),
            fold(w3, b3, HID_PAD, HID_PAD, True),
            fold(w4, b4, HID_PAD, OUT_PAD, False))


@jax.jit
def qnetwork_forward(x, w1p, w2p, w3p, w4p):
    """x: (B, N_STATES) float32.  w*p: folded weights from fold_params (once at init)."""
    B = x.shape[0]

    # Batch tiling: minimal 8-row padding, tiles capped at TB_MAX.  For >=1024
    # padded rows force at least 2 grid steps so v7x can use both TensorCores.
    b_rounded = _round_up(B, 8)
    n_steps = _cdiv(b_rounded, TB_MAX)
    if n_steps == 1 and b_rounded >= 1024:
        n_steps = 2
    tb = _round_up(_cdiv(b_rounded, n_steps), 8)
    b_pad = n_steps * tb

    # Narrow (8-lane) padded input: features in lanes 0..1, constant 1.0 in
    # lane 7 (bias carrier).  Padded batch rows are harmless (sliced off).
    x_pad = jnp.zeros((b_pad, IN_PAD), jnp.float32)
    x_pad = x_pad.at[:B, :N_STATES].set(x.astype(jnp.float32))
    x_pad = x_pad.at[:, IN_PAD - 1].set(1.0)

    # Advisory cost: the padded FLOPs the kernel actually executes + real bytes moved.
    flops = 2 * b_pad * (IN_PAD * HID_PAD + 2 * HID_PAD * HID_PAD + HID_PAD * OUT_PAD)
    bytes_accessed = 4 * (b_pad * IN_PAD + b_pad * OUT_PAD
                          + IN_PAD * HID_PAD + 2 * HID_PAD * HID_PAD
                          + HID_PAD * OUT_PAD)
    cost = pl.CostEstimate(flops=flops, transcendentals=0,
                           bytes_accessed=bytes_accessed)

    w_hid_spec = pl.BlockSpec((HID_PAD, HID_PAD), lambda i: (0, 0))  # VMEM-resident

    out_pad = pl.pallas_call(
        qnet_kernel,
        out_shape=jax.ShapeDtypeStruct((b_pad, OUT_PAD), jnp.float32),
        grid=(n_steps,),
        in_specs=[
            pl.BlockSpec((tb, IN_PAD), lambda i: (i, 0)),
            pl.BlockSpec((IN_PAD, HID_PAD), lambda i: (0, 0)),
            w_hid_spec,
            w_hid_spec,
            pl.BlockSpec((HID_PAD, OUT_PAD), lambda i: (0, 0)),
        ],
        out_specs=pl.BlockSpec((tb, OUT_PAD), lambda i: (i, 0)),
        compiler_params=pltpu.CompilerParams(
            dimension_semantics=("parallel",)),  # shard batch tiles over v7x's 2 TCs
        cost_estimate=cost,
    )(x_pad, w1p, w2p, w3p, w4p)

    return out_pad[:B, :N_ACTIONS]


def init_params(key):
    """Deterministic init mirroring torch.nn.Linear's U(-1/sqrt(fan_in), ...)."""
    dims = [N_STATES] + H + [N_ACTIONS]   # [2, 10, 100, 10, 2]
    params = []
    for d_in, d_out in zip(dims, dims[1:]):
        key, kw, kb = jax.random.split(key, 3)
        bound = 1.0 / math.sqrt(d_in)
        # torch stores W as (out, in); we store pre-transposed (in, out).
        w = jax.random.uniform(kw, (d_in, d_out), jnp.float32, -bound, bound)
        b = jax.random.uniform(kb, (1, d_out), jnp.float32, -bound, bound)
        params.append((w, b))
    return params


def reference_forward(x, params):
    y = x
    for i, (w, b) in enumerate(params):
        y = y @ w + b
        if i < len(params) - 1:
            y = jnp.maximum(y, 0.0)
    return y


if __name__ == "__main__":
    # TODO(synk): fit_once (MSELoss + SGD step) is training, not the forward pass — not ported.
    key = jax.random.PRNGKey(0)
    key, kx1, kx2, kx3 = jax.random.split(key, 4)
    params = init_params(key)
    w1p, w2p, w3p, w4p = fold_params(params)   # folded ONCE at init, reused per call

    # Small batch (single grid step).
    x_small = jax.random.normal(kx1, (8, N_STATES), jnp.float32)
    out_small = jax.block_until_ready(qnetwork_forward(x_small, w1p, w2p, w3p, w4p))
    ref_small = reference_forward(x_small, params)
    assert out_small.shape == (8, N_ACTIONS)
    assert jnp.allclose(out_small, ref_small, atol=1e-5, rtol=1e-5), \
        "mismatch vs JAX reference (small batch)"

    # Non-multiple batch: 300 -> padded to 304 rows, still a single step.
    x_mid = jax.random.normal(kx2, (300, N_STATES), jnp.float32)
    out_mid = jax.block_until_ready(qnetwork_forward(x_mid, w1p, w2p, w3p, w4p))
    ref_mid = reference_forward(x_mid, params)
    assert out_mid.shape == (300, N_ACTIONS)
    assert jnp.allclose(out_mid, ref_mid, atol=1e-5, rtol=1e-5), \
        "mismatch vs JAX reference (padded batch)"

    # Large batch: exercises the multi-step batch-tiled grid (3 tiles of 840 rows).
    x_big = jax.random.normal(kx3, (2500, N_STATES), jnp.float32)
    out_big = jax.block_until_ready(qnetwork_forward(x_big, w1p, w2p, w3p, w4p))
    ref_big = reference_forward(x_big, params)
    assert out_big.shape == (2500, N_ACTIONS)
    assert jnp.allclose(out_big, ref_big, atol=1e-5, rtol=1e-5), \
        "mismatch vs JAX reference (multi-tile grid)"

    print("KERNEL_OK")
</pallas_src>

<mosaic_0001>
module attributes {stable_mosaic.version = 11 : i64} {
  func.func @qnet_kernel(%arg0: i32, %arg1: memref<8x8xf32, #tpu.memory_space<vmem>>, %arg2: memref<8x128xf32, #tpu.memory_space<vmem>>, %arg3: memref<128x128xf32, #tpu.memory_space<vmem>>, %arg4: memref<128x128xf32, #tpu.memory_space<vmem>>, %arg5: memref<128x8xf32, #tpu.memory_space<vmem>>, %arg6: memref<8x8xf32, #tpu.memory_space<vmem>>) attributes {dimension_semantics = [#tpu.dimension_semantics<parallel>], iteration_bounds = array<i64: 1>, scalar_prefetch = 0 : i64, scratch_operands = 0 : i64, tpu.core_type = #tpu.core_type<tc>, window_params = [{transform_indices = @transform_0, window_bounds = array<i64: 8, 8>}, {pipeline_mode = #tpu.pipeline_mode<synchronous>, transform_indices = @transform_1, window_bounds = array<i64: 8, 128>}, {pipeline_mode = #tpu.pipeline_mode<synchronous>, transform_indices = @transform_2, window_bounds = array<i64: 128, 128>}, {pipeline_mode = #tpu.pipeline_mode<synchronous>, transform_indices = @transform_3, window_bounds = array<i64: 128, 128>}, {pipeline_mode = #tpu.pipeline_mode<synchronous>, transform_indices = @transform_4, window_bounds = array<i64: 128, 8>}, {transform_indices = @transform_5, window_bounds = array<i64: 8, 8>}]} {
    %c0 = arith.constant 0 : index
    %c0_0 = arith.constant 0 : index
    %0 = vector.load %arg1[%c0, %c0_0] : memref<8x8xf32, #tpu.memory_space<vmem>>, vector<8x8xf32>
    %c0_1 = arith.constant 0 : index
    %c0_2 = arith.constant 0 : index
    %1 = vector.load %arg2[%c0_1, %c0_2] : memref<8x128xf32, #tpu.memory_space<vmem>>, vector<8x128xf32>
    %cst = arith.constant dense<0.000000e+00> : vector<8x128xf32>
    %2 = tpu.matmul %0, %1, %cst {dimension_numbers = #tpu.dot_dimension_numbers<[1], [0], [0], [1], [0, 0, 1, 1], [], []>} : vector<8x8xf32>, vector<8x128xf32>, vector<8x128xf32> -> vector<8x128xf32>
    %cst_3 = arith.constant 0.000000e+00 : f32
    %3 = vector.broadcast %cst_3 : f32 to vector<8x128xf32>
    %4 = arith.maximumf %2, %3 : vector<8x128xf32>
    %c0_4 = arith.constant 0 : index
    %c0_5 = arith.constant 0 : index
    %5 = vector.load %arg3[%c0_4, %c0_5] : memref<128x128xf32, #tpu.memory_space<vmem>>, vector<128x128xf32>
    %cst_6 = arith.constant dense<0.000000e+00> : vector<8x128xf32>
    %6 = tpu.matmul %4, %5, %cst_6 {dimension_numbers = #tpu.dot_dimension_numbers<[1], [0], [0], [1], [0, 0, 1, 1], [], []>} : vector<8x128xf32>, vector<128x128xf32>, vector<8x128xf32> -> vector<8x128xf32>
    %cst_7 = arith.constant 0.000000e+00 : f32
    %7 = vector.broadcast %cst_7 : f32 to vector<8x128xf32>
    %8 = arith.maximumf %6, %7 : vector<8x128xf32>
    %c0_8 = arith.constant 0 : index
    %c0_9 = arith.constant 0 : index
    %9 = vector.load %arg4[%c0_8, %c0_9] : memref<128x128xf32, #tpu.memory_space<vmem>>, vector<128x128xf32>
    %cst_10 = arith.constant dense<0.000000e+00> : vector<8x128xf32>
    %10 = tpu.matmul %8, %9, %cst_10 {dimension_numbers = #tpu.dot_dimension_numbers<[1], [0], [0], [1], [0, 0, 1, 1], [], []>} : vector<8x128xf32>, vector<128x128xf32>, vector<8x128xf32> -> vector<8x128xf32>
    %cst_11 = arith.constant 0.000000e+00 : f32
    %11 = vector.broadcast %cst_11 : f32 to vector<8x128xf32>
    %12 = arith.maximumf %10, %11 : vector<8x128xf32>
    %c0_12 = arith.constant 0 : index
    %c0_13 = arith.constant 0 : index
    %13 = vector.load %arg5[%c0_12, %c0_13] : memref<128x8xf32, #tpu.memory_space<vmem>>, vector<128x8xf32>
    %cst_14 = arith.constant dense<0.000000e+00> : vector<8x8xf32>
    %14 = tpu.matmul %12, %13, %cst_14 {dimension_numbers = #tpu.dot_dimension_numbers<[1], [0], [0], [1], [0, 0, 1, 1], [], []>} : vector<8x128xf32>, vector<128x8xf32>, vector<8x8xf32> -> vector<8x8xf32>
    %c0_15 = arith.constant 0 : index
    %c0_16 = arith.constant 0 : index
    %15 = vector.load %arg6[%c0_15, %c0_16] : memref<8x8xf32, #tpu.memory_space<vmem>>, vector<8x8xf32>
    tpu.vector_store %arg6[%c0_15, %c0_16], %14 {strides = array<i32>} : memref<8x8xf32, #tpu.memory_space<vmem>>, vector<8x8xf32>,
    return
  }
  func.func @transform_0(%arg0: i32) -> (i32, i32) {
    %c0_i32 = arith.constant 0 : i32
    %c0_i32_0 = arith.constant 0 : i32
    return %arg0, %c0_i32 : i32, i32
  }
  func.func @transform_1(%arg0: i32) -> (i32, i32) {
    %c0_i32 = arith.constant 0 : i32
    %c0_i32_0 = arith.constant 0 : i32
    %c0_i32_1 = arith.constant 0 : i32
    return %c0_i32, %c0_i32_0 : i32, i32
  }
  func.func @transform_2(%arg0: i32) -> (i32, i32) {
    %c0_i32 = arith.constant 0 : i32
    %c0_i32_0 = arith.constant 0 : i32
    %c0_i32_1 = arith.constant 0 : i32
    return %c0_i32, %c0_i32_0 : i32, i32
  }
  func.func @transform_3(%arg0: i32) -> (i32, i32) {
    %c0_i32 = arith.constant 0 : i32
    %c0_i32_0 = arith.constant 0 : i32
    %c0_i32_1 = arith.constant 0 : i32
    return %c0_i32, %c0_i32_0 : i32, i32
  }
  func.func @transform_4(%arg0: i32) -> (i32, i32) {
    %c0_i32 = arith.constant 0 : i32
    %c0_i32_0 = arith.constant 0 : i32
    %c0_i32_1 = arith.constant 0 : i32
    return %c0_i32, %c0_i32_0 : i32, i32
  }
  func.func @transform_5(%arg0: i32) -> (i32, i32) {
    %c0_i32 = arith.constant 0 : i32
    %c0_i32_0 = arith.constant 0 : i32
    return %arg0, %c0_i32 : i32, i32
  }
}

</mosaic_0001>

<bundles_post_ra>
// kernel: qnetwork_forward.1
= control target key start
LH: loop header
LB: loop body
LE: loop exit
PB: predicated region body
PF: predicated region fallthrough
CT: control target
= control target key end

     0   :  { %10 = vsyncpa [#allocation3], 0  ;;  %s209_s21 = smov [#allocation2]   ;;  %s210_s23 = smov 128   ;;  %s352_s0 = inlined_call_operand.vmem [shape: f32[8,8], index: 0, kind: input, shape index: {}]   ;;  %s353_s1 = inlined_call_operand.vmem [shape: f32[8,128], index: 1, kind: input, shape index: {}]   ;;  %s354_s2 = inlined_call_operand.vmem [shape: f32[128,128], index: 2, kind: input, shape index: {}]   ;;  %s355_s3 = inlined_call_operand.hbm [shape: f32[128,128], index: 3, kind: input, shape index: {}]   ;;  %s356_s4 = inlined_call_operand.vmem [shape: f32[128,8], index: 4, kind: input, shape index: {}]   ;;  %s357_s5 = inlined_call_operand.vmem [shape: f32[8,8], index: 5, kind: output, shape index: {}]  }
   0x1   :  { %s21_s20 = sshll.u32 %s355_s3, 4  ;;  %s23_s22 = sshll.u32 %s209_s21, 4  ;;  %s22_s20 = int_to_ptr.hbm [resolvable:$true] %s21_s20  ;;  %s24_s22 = int_to_ptr.vmem [resolvable:$true] %s23_s22 }
   0x2   :  { %s211_s24 = smov 8  }
   0x3   :  { %29 = dma.hbm_to_vmem [thread:$0]  %s22_s20, 2048, %s24_s22, [#allocation3], %s210_s23, %s210_s23, %s211_s24  }
   0x4   :  { %207 = dma.done.wait [#allocation3], 2048  }
   0x5   :  { %208 = vsyncadd [#allocation3], 4294965248  ;;  %vm38_vm0 = vcmask 64512   ;;  %v37_v0 = vld [vmem:[%s353_s1] sm:$0xff]  ;;  %v78_v2 = vld [vmem:[%s354_s2 + $0x78] sm:$0xff] }
   0x6   :  { %v36_v1 = vld [vmem:[%s352_s0] sm:$0xff]  ;;  %57 = vmatpush.msra.mxu0 %v37_v0  ;;  %79 = vmatpush.msra.mxu1 %v78_v2  ;;  %v77_v3 = vld [vmem:[%s354_s2 + $0x70] sm:$0xff]  ;;  %v76_v4 = vld [vmem:[%s354_s2 + $0x68] sm:$0xff] }
   0x7   :  { %179 = vmatmul.msk.f32.vlgmr.msra.gmra.mxu0 %vm38_vm0, %v36_v1  ;;  %v75_v5 = vld [vmem:[%s354_s2 + $0x60] sm:$0xff]  ;;  %v74_v6 = vld [vmem:[%s354_s2 + $0x58] sm:$0xff]  ;;  %v73_v7 = vld [vmem:[%s354_s2 + $0x50] sm:$0xff] }
   0x8   :  { %80 = vmatpush.msra.mxu1 %v77_v3  ;;  %v72_v8 = vld [vmem:[%s354_s2 + $0x48] sm:$0xff]  ;;  %v71_v9 = vld [vmem:[%s354_s2 + $0x40] sm:$0xff]  ;;  %v70_v10 = vld [vmem:[%s354_s2 + $0x38] sm:$0xff] }
   0x9   :  { %v69_v11 = vld [vmem:[%s354_s2 + $0x30] sm:$0xff]  ;;  %v68_v12 = vld [vmem:[%s354_s2 + $0x28] sm:$0xff]  ;;  %v67_v13 = vld [vmem:[%s354_s2 + $0x20] sm:$0xff] }
   0xa   :  { %81 = vmatpush.msra.mxu1 %v76_v4  ;;  %v66_v14 = vld [vmem:[%s354_s2 + $0x18] sm:$0xff]  ;;  %v65_v15 = vld [vmem:[%s354_s2 + $0x10] sm:$0xff]  ;;  %v64_v16 = vld [vmem:[%s354_s2 + $0x8] sm:$0xff] }
   0xb   :  { %v63_v17 = vld [vmem:[%s354_s2] sm:$0xff]  ;;  %v115_v18 = vld [vmem:[#allocation2 + $0x78] sm:$0xff]  ;;  %v114_v19 = vld [vmem:[#allocation2 + $0x70] sm:$0xff] }
   0xc   :  { %82 = vmatpush.msra.mxu1 %v75_v5  ;;  %116 = vmatpush.msra.mxu2 %v115_v18  ;;  %v113_v20 = vld [vmem:[#allocation2 + $0x68] sm:$0xff]  ;;  %v112_v21 = vld [vmem:[#allocation2 + $0x60] sm:$0xff]  ;;  %v111_v22 = vld [vmem:[#allocation2 + $0x58] sm:$0xff] }
   0xd   :  { %v110_v23 = vld [vmem:[#allocation2 + $0x50] sm:$0xff]  ;;  %v109_v24 = vld [vmem:[#allocation2 + $0x48] sm:$0xff]  ;;  %v108_v25 = vld [vmem:[#allocation2 + $0x40] sm:$0xff] }
   0xe   :  { %83 = vmatpush.msra.mxu1 %v74_v6  ;;  %117 = vmatpush.msra.mxu2 %v114_v19  ;;  %v107_v26 = vld [vmem:[#allocation2 + $0x38] sm:$0xff]  ;;  %v106_v27 = vld [vmem:[#allocation2 + $0x30] sm:$0xff]  ;;  %v105_v28 = vld [vmem:[#allocation2 + $0x28] sm:$0xff] }
   0xf   :  { %v104_v29 = vld [vmem:[#allocation2 + $0x20] sm:$0xff]  ;;  %v103_v30 = vld [vmem:[#allocation2 + $0x18] sm:$0xff]  ;;  %v102_v31 = vld [vmem:[#allocation2 + $0x10] sm:$0xff] }
  0x10   :  { %84 = vmatpush.msra.mxu1 %v73_v7  ;;  %118 = vmatpush.msra.mxu2 %v113_v20  ;;  %v101_v34 = vld [vmem:[#allocation2 + $0x8] sm:$0xff]  ;;  %v100_v35 = vld [vmem:[#allocation2] sm:$0xff]  ;;  %v152_v36 = vld [vmem:[%s356_s4 + $0x78] sm:$0xff] }
  0x11   :  { %v151_v37 = vld [vmem:[%s356_s4 + $0x70] sm:$0xff]  ;;  %153 = vmatpush.msra.mxu3 %v152_v36  ;;  %v150_v38 = vld [vmem:[%s356_s4 + $0x68] sm:$0xff]  ;;  %v149_v39 = vld [vmem:[%s356_s4 + $0x60] sm:$0xff] }
  0x12   :  { %85 = vmatpush.msra.mxu1 %v72_v8  ;;  %119 = vmatpush.msra.mxu2 %v112_v21  ;;  %v148_v40 = vld [vmem:[%s356_s4 + $0x58] sm:$0xff]  ;;  %v147_v41 = vld [vmem:[%s356_s4 + $0x50] sm:$0xff]  ;;  %v146_v42 = vld [vmem:[%s356_s4 + $0x48] sm:$0xff] }
  0x13   :  { %154 = vmatpush.msra.mxu3 %v151_v37  ;;  %v145_v43 = vld [vmem:[%s356_s4 + $0x40] sm:$0xff]  ;;  %v144_v44 = vld [vmem:[%s356_s4 + $0x38] sm:$0xff]  ;;  %v143_v45 = vld [vmem:[%s356_s4 + $0x30] sm:$0xff] }
  0x14   :  { %86 = vmatpush.msra.mxu1 %v71_v9  ;;  %120 = vmatpush.msra.mxu2 %v111_v22  ;;  %v142_v46 = vld [vmem:[%s356_s4 + $0x28] sm:$0xff]  ;;  %v141_v47 = vld [vmem:[%s356_s4 + $0x20] sm:$0xff]  ;;  %v140_v48 = vld [vmem:[%s356_s4 + $0x18] sm:$0xff] }
  0x15   :  { %155 = vmatpush.msra.mxu3 %v150_v38  ;;  %v139_v49 = vld [vmem:[%s356_s4 + $0x10] sm:$0xff]  ;;  %v138_v52 = vld [vmem:[%s356_s4 + $0x8] sm:$0xff]  ;;  %v137_v53 = vld [vmem:[%s356_s4] sm:$0xff] }
  0x16   :  { %87 = vmatpush.msra.mxu1 %v70_v10  ;;  %121 = vmatpush.msra.mxu2 %v110_v23 }
  0x17   :  { %156 = vmatpush.msra.mxu3 %v149_v39 }
  0x18   :  { %88 = vmatpush.msra.mxu1 %v69_v11  ;;  %122 = vmatpush.msra.mxu2 %v109_v24 }
  0x19   :  { %157 = vmatpush.msra.mxu3 %v148_v40 }
  0x1a   :  { %89 = vmatpush.msra.mxu1 %v68_v12  ;;  %123 = vmatpush.msra.mxu2 %v108_v25 }
  0x1b   :  { %158 = vmatpush.msra.mxu3 %v147_v41 }
  0x1c   :  { %90 = vmatpush.msra.mxu1 %v67_v13  ;;  %124 = vmatpush.msra.mxu2 %v107_v26 }
  0x1d   :  { %159 = vmatpush.msra.mxu3 %v146_v42 }
  0x1e   :  { %91 = vmatpush.msra.mxu1 %v66_v14  ;;  %125 = vmatpush.msra.mxu2 %v106_v27 }
  0x1f   :  { %160 = vmatpush.msra.mxu3 %v145_v43 }
  0x20   :  { %92 = vmatpush.msra.mxu1 %v65_v15  ;;  %126 = vmatpush.msra.mxu2 %v105_v28 }
  0x21   :  { %161 = vmatpush.msra.mxu3 %v144_v44 }
  0x22   :  { %93 = vmatpush.msra.mxu1 %v64_v16  ;;  %127 = vmatpush.msra.mxu2 %v104_v29 }
  0x23   :  { %162 = vmatpush.msra.mxu3 %v143_v45 }
  0x24   :  { %94 = vmatpush.msra.mxu1 %v63_v17  ;;  %128 = vmatpush.msra.mxu2 %v103_v30 }
  0x25   :  { %163 = vmatpush.msra.mxu3 %v142_v46 }
  0x26   :  { %129 = vmatpush.msra.mxu2 %v102_v31 }
  0x27   :  { %164 = vmatpush.msra.mxu3 %v141_v47 }
  0x28   :  { %130 = vmatpush.msra.mxu2 %v101_v34 }
  0x29   :  { %165 = vmatpush.msra.mxu3 %v140_v48 }
  0x2a   :  { %131 = vmatpush.msra.mxu2 %v100_v35 }
  0x2b   :  { %166 = vmatpush.msra.mxu3 %v139_v49 }
  0x2d   :  { %167 = vmatpush.msra.mxu3 %v138_v52 }
  0x2f   :  { %168 = vmatpush.msra.mxu3 %v137_v53 }
  0x84   :  { %v59_v32 = vpop.f32.mrf.mxu0 }
  0x85   :  { %v62_v33 = vmax.f32 %v59_v32, 0.0 }
  0x87   :  { %95 = vmatmul.f32.vlgmr.msra.gmra.mxu1 %v62_v33 }
 0x104   :  { %v96_v50 = vpop.f32.mrf.mxu1 }
 0x105   :  { %v99_v51 = vmax.f32 %v96_v50, 0.0 }
 0x107   :  { %132 = vmatmul.f32.vlgmr.msra.gmra.mxu2 %v99_v51 }
 0x18a   :  { %v133_v54 = vpop.f32.mrf.mxu2 }
 0x18b   :  { %v136_v55 = vmax.f32 %v133_v54, 0.0 }
 0x18d   :  { %169 = vmatmul.f32.vlgmr.msra.gmra.mxu3 %v136_v55 }
 0x210   :  { %v170_v56 = vpop.f32.mrf.mxu3 }
 0x211   :  { %173 = vst.msk [vmem:[%s357_s5] sm:$0xff] %vm38_vm0, %v170_v56 }
 0x212   :  { %178 = vsyncpa [#allocation3], 1 }

</bundles_post_ra>
